<compile_context>
chip_gen: v7x
topology: tpu7x:2x2x1
jax: 0.10.0
libtpu: 0.0.40
codegen_flags: <defaults>
</compile_context>

<pallas_src>
import functools

import jax
import jax.numpy as jnp
from jax.experimental import pallas as pl
from jax.experimental.pallas import tpu as pltpu


_VMEM_LIMIT = 64 * 1024 * 1024


def _segment_matrices(n_state: int, n_head: int):
    """One-hot head-membership matrices: S[j, h] = St[h, j] = (head(j) == h)."""
    d_head = n_state // n_head
    col = jax.lax.broadcasted_iota(jnp.int32, (n_state, n_head), 0)
    hid = jax.lax.broadcasted_iota(jnp.int32, (n_state, n_head), 1)
    S = (col // d_head == hid).astype(jnp.float32)        # [D, H]
    return S, S.T                                          # S, St ([H, D])


# --------------------------- self-attention kernel ---------------------------
def _make_self_attention_kernel(n_head, n_state, t_cache, cache_dtype):
    d_head = n_state // n_head
    qk_scale = float(d_head) ** (-0.5)   # both d**-0.25 scales folded into q
    T = t_cache
    Tk = T + 1

    def kernel(x_ref, wq_ref, bq_ref, wk_ref, wv_ref, bv_ref, wo_ref, bo_ref,
               s_ref, st_ref, kc_ref, vc_ref,
               out_ref, k_out_ref, v_out_ref):
        x = x_ref[...].astype(jnp.bfloat16)                                 # [1, D]

        # --- q / k / v projections (bf16 operands, f32 accumulation) -------
        q = jnp.dot(x, wq_ref[...], preferred_element_type=jnp.float32) + bq_ref[...]
        k_new = jnp.dot(x, wk_ref[...], preferred_element_type=jnp.float32)
        v_new = jnp.dot(x, wv_ref[...], preferred_element_type=jnp.float32) + bv_ref[...]

        # --- cache concat written straight into the outputs ----------------
        k_out_ref[pl.ds(0, T), :] = kc_ref[...]
        k_out_ref[pl.ds(T, 1), :] = k_new.astype(cache_dtype)
        v_out_ref[pl.ds(0, T), :] = vc_ref[...]
        v_out_ref[pl.ds(T, 1), :] = v_new.astype(cache_dtype)

        k_full = k_out_ref[...].astype(jnp.float32)                          # [Tk, D]
        v_full = v_out_ref[...].astype(jnp.float32)                          # [Tk, D]

        # --- per-head scores: head reduction as an MXU matmul with S -------
        qs = q * qk_scale                                                    # [1, D]
        qk = jnp.dot(qs * k_full, s_ref[...],
                     preferred_element_type=jnp.float32)                     # [Tk, H]

        # --- float32 softmax over keys; sums as ones-vector MXU matmuls ----
        m = jnp.max(qk, axis=0, keepdims=True)                               # [1, H]
        e = jnp.exp(qk - m)                                                  # [Tk, H]
        ones_row = jnp.ones((1, Tk), jnp.float32)
        l = jnp.dot(ones_row, e, preferred_element_type=jnp.float32)         # [1, H]
        inv_l = pl.reciprocal(l, approx=True)                                # [1, H]

        # --- weighted value sum + normalization -----------------------------
        e_cols = jnp.dot(e, st_ref[...], preferred_element_type=jnp.float32) # [Tk, D]
        wv = jnp.dot(ones_row, e_cols * v_full,
                     preferred_element_type=jnp.float32)                     # [1, D]
        wv = wv * jnp.dot(inv_l, st_ref[...], preferred_element_type=jnp.float32)

        # --- output projection ----------------------------------------------
        out_ref[...] = jnp.dot(wv.astype(jnp.bfloat16), wo_ref[...],
                               preferred_element_type=jnp.float32) + bo_ref[...]

    return kernel


# -------------------------- cross-attention kernel ---------------------------
def _make_cross_attention_kernel(n_head, n_state, t_kv, kv_block):
    d_head = n_state // n_head
    qk_scale = float(d_head) ** (-0.5)
    TB = kv_block

    def kernel(x_ref, wq_ref, bq_ref, wo_ref, bo_ref, s_ref, st_ref,
               kc_ref, vc_ref, out_ref, q_sc, m_sc, l_sc, acc_sc):
        blk = pl.program_id(0)
        nblk = pl.num_programs(0)

        @pl.when(blk == 0)
        def _init():
            x = x_ref[...].astype(jnp.bfloat16)
            q = jnp.dot(x, wq_ref[...],
                        preferred_element_type=jnp.float32) + bq_ref[...]
            q_sc[...] = q * qk_scale
            m_sc[...] = jnp.full_like(m_sc, -jnp.inf)
            l_sc[...] = jnp.zeros_like(l_sc)
            acc_sc[...] = jnp.zeros_like(acc_sc)

        k = kc_ref[...].astype(jnp.float32)                                  # [TB, D]
        v = vc_ref[...].astype(jnp.float32)                                  # [TB, D]

        # validity mask for the (possibly padded) final block
        row_h = blk * TB + jax.lax.broadcasted_iota(jnp.int32, (TB, n_head), 0)
        row_d = blk * TB + jax.lax.broadcasted_iota(jnp.int32, (TB, n_state), 0)
        valid_h = row_h < t_kv                                               # [TB, H]
        valid_d = row_d < t_kv                                               # [TB, D]

        qk = jnp.dot(q_sc[...] * k, s_ref[...],
                     preferred_element_type=jnp.float32)                     # [TB, H]
        qk = jnp.where(valid_h, qk, -jnp.inf)

        # online softmax update
        m_blk = jnp.max(qk, axis=0, keepdims=True)                           # [1, H]
        m_new = jnp.maximum(m_sc[...], m_blk)
        alpha = jnp.exp(m_sc[...] - m_new)                                   # [1, H]
        e = jnp.exp(qk - m_new)                                              # [TB, H]

        ones_row = jnp.ones((1, TB), jnp.float32)
        l_sc[...] = alpha * l_sc[...] + jnp.dot(
            ones_row, e, preferred_element_type=jnp.float32)

        e_cols = jnp.dot(e, st_ref[...], preferred_element_type=jnp.float32) # [TB, D]
        v_safe = jnp.where(valid_d, v, 0.0)
        alpha_cols = jnp.dot(alpha, st_ref[...],
                             preferred_element_type=jnp.float32)             # [1, D]
        acc_sc[...] = alpha_cols * acc_sc[...] + jnp.dot(
            ones_row, e_cols * v_safe, preferred_element_type=jnp.float32)
        m_sc[...] = m_new

        @pl.when(blk == nblk - 1)
        def _finalize():
            inv_l = pl.reciprocal(l_sc[...], approx=True)                    # [1, H]
            wv = acc_sc[...] * jnp.dot(inv_l, st_ref[...],
                                       preferred_element_type=jnp.float32)   # [1, D]
            out_ref[...] = jnp.dot(wv.astype(jnp.bfloat16), wo_ref[...],
                                   preferred_element_type=jnp.float32) + bo_ref[...]

    return kernel


# --------------------------------- wrapper -----------------------------------
@functools.partial(jax.jit, static_argnames=("attn_type", "n_head", "kv_block"))
def mha_wrapper_forward(x, params, k_cache, v_cache, *, attn_type, n_head,
                        kv_block=256):
    """Pallas implementation of MHAWrapper.forward.

    x:        [1, 1, n_state]
    k_cache:  [1, T, n_state]
    v_cache:  [1, T, n_state]
    returns:  (x_out [1,1,n_state], k, v)
              self_attention : k, v = cache + new token  ([1, T+1, n_state])
              cross_attention: k, v = cache, unchanged    ([1, T,   n_state])
    """
    n_state = x.shape[-1]
    T = k_cache.shape[1]

    x2 = x.reshape(1, n_state)
    S, St = _segment_matrices(n_state, n_head)   # constants under jit

    compiler_params = pltpu.CompilerParams(
        dimension_semantics=("arbitrary",),
        vmem_limit_bytes=_VMEM_LIMIT)

    resident = lambda i: (0, 0)

    if attn_type == "cross_attention":
        kc2 = k_cache.reshape(T, n_state)
        vc2 = v_cache.reshape(T, n_state)
        assert kv_block % 8 == 0
        tb = kv_block if T >= kv_block else T     # full-dim block if cache is short
        nblk = pl.cdiv(T, tb)
        stream = lambda i: (i, 0)

        kernel = _make_cross_attention_kernel(n_head, n_state, T, tb)
        x_out = pl.pallas_call(
            kernel,
            grid=(nblk,),
            in_specs=[
                pl.BlockSpec((1, n_state), resident),         # x
                pl.BlockSpec((n_state, n_state), resident),   # wq (bf16)
                pl.BlockSpec((1, n_state), resident),         # bq
                pl.BlockSpec((n_state, n_state), resident),   # wo (bf16)
                pl.BlockSpec((1, n_state), resident),         # bo
                pl.BlockSpec((n_state, n_head), resident),    # S
                pl.BlockSpec((n_head, n_state), resident),    # St
                pl.BlockSpec((tb, n_state), stream),          # k cache blocks
                pl.BlockSpec((tb, n_state), stream),          # v cache blocks
            ],
            out_specs=pl.BlockSpec((1, n_state), resident),
            out_shape=jax.ShapeDtypeStruct((1, n_state), jnp.float32),
            scratch_shapes=[
                pltpu.VMEM((1, n_state), jnp.float32),   # scaled q
                pltpu.VMEM((1, n_head), jnp.float32),    # running max
                pltpu.VMEM((1, n_head), jnp.float32),    # running sum
                pltpu.VMEM((1, n_state), jnp.float32),   # running weighted V
            ],
            compiler_params=compiler_params,
        )(x2, params["wq"], params["bq"], params["wo"], params["bo"],
          S, St, kc2, vc2)

        # Cross-attention never modifies the cache -> return it untouched
        # (no kernel round-trip / HBM copy of the cache).
        return x_out.astype(x.dtype).reshape(1, 1, n_state), k_cache, v_cache

    # ------------------------------ self-attention ---------------------------
    kc2 = k_cache.reshape(T, n_state)
    vc2 = v_cache.reshape(T, n_state)
    Tk = T + 1
    cache_dtype = k_cache.dtype

    # TODO(synk): the module's "return cache + 1 new row" contract forces a new
    # (T+1)-shaped output (and therefore a recompile) every decode step; a
    # fixed max-length cache aliased via input_output_aliases with a
    # scalar-prefetch length would remove both, but changes the interface.
    kernel = _make_self_attention_kernel(n_head, n_state, T, cache_dtype)
    x_out, k_out, v_out = pl.pallas_call(
        kernel,
        grid=(1,),
        in_specs=[
            pl.BlockSpec((1, n_state), resident),             # x
            pl.BlockSpec((n_state, n_state), resident),       # wq (bf16)
            pl.BlockSpec((1, n_state), resident),             # bq
            pl.BlockSpec((n_state, n_state), resident),       # wk (bf16)
            pl.BlockSpec((n_state, n_state), resident),       # wv (bf16)
            pl.BlockSpec((1, n_state), resident),             # bv
            pl.BlockSpec((n_state, n_state), resident),       # wo (bf16)
            pl.BlockSpec((1, n_state), resident),             # bo
            pl.BlockSpec((n_state, n_head), resident),        # S
            pl.BlockSpec((n_head, n_state), resident),        # St
            pl.BlockSpec((T, n_state), resident),             # k cache
            pl.BlockSpec((T, n_state), resident),             # v cache
        ],
        out_specs=(
            pl.BlockSpec((1, n_state), resident),
            pl.BlockSpec((Tk, n_state), resident),
            pl.BlockSpec((Tk, n_state), resident),
        ),
        out_shape=(
            jax.ShapeDtypeStruct((1, n_state), jnp.float32),
            jax.ShapeDtypeStruct((Tk, n_state), cache_dtype),
            jax.ShapeDtypeStruct((Tk, n_state), cache_dtype),
        ),
        compiler_params=compiler_params,
    )(x2, params["wq"], params["bq"], params["wk"], params["wv"], params["bv"],
      params["wo"], params["bo"], S, St, kc2, vc2)

    return (x_out.astype(x.dtype).reshape(1, 1, n_state),
            k_out.reshape(1, Tk, n_state),
            v_out.reshape(1, Tk, n_state))


# ---------------------------- pure-JAX reference -----------------------------
def _ref_forward(x, params, k_cache, v_cache, *, attn_type, n_head):
    f32 = jnp.float32
    wq, bq = params["wq"].astype(f32), params["bq"].astype(f32)
    wk = params["wk"].astype(f32)
    wv_, bv = params["wv"].astype(f32), params["bv"].astype(f32)
    wo, bo = params["wo"].astype(f32), params["bo"].astype(f32)

    xf = x.astype(f32)
    q = xf @ wq + bq
    if attn_type == "self_attention":
        k_new = xf @ wk
        v_new = xf @ wv_ + bv
        k = jnp.concatenate([k_cache.astype(f32), k_new], axis=1)
        v = jnp.concatenate([v_cache.astype(f32), v_new], axis=1)
    else:
        k, v = k_cache.astype(f32), v_cache.astype(f32)
    B, n_ctx, D = q.shape
    d = D // n_head
    scale = d ** (-0.25)
    qh = q.reshape(B, n_ctx, n_head, d).transpose(0, 2, 1, 3) * scale
    kh = k.reshape(B, -1, n_head, d).transpose(0, 2, 3, 1) * scale
    vh = v.reshape(B, -1, n_head, d).transpose(0, 2, 1, 3)
    qk = qh @ kh
    w = jax.nn.softmax(qk.astype(f32), axis=-1)
    wv_out = (w @ vh).transpose(0, 2, 1, 3).reshape(B, n_ctx, D)
    return wv_out @ wo + bo, k, v


if __name__ == "__main__":
    # Small Whisper-like MHA: n_state=32, n_head=4.
    n_state, n_head = 32, 4
    dec_len = 7      # self-attention (decoder) cache length
    enc_len = 12     # cross-attention (encoder) cache length -> 2 KV blocks of 8

    key = jax.random.PRNGKey(0)
    ks = jax.random.split(key, 12)

    def w(k):  # projection weights stored bf16 (halved HBM traffic)
        return (0.02 * jax.random.normal(k, (n_state, n_state),
                                         dtype=jnp.float32)).astype(jnp.bfloat16)

    def b(k):
        return 0.02 * jax.random.normal(k, (1, n_state), dtype=jnp.float32)

    params = {
        "wq": w(ks[0]), "bq": b(ks[1]),
        "wk": w(ks[2]),                     # whisper key projection has no bias
        "wv": w(ks[3]), "bv": b(ks[4]),
        "wo": w(ks[5]), "bo": b(ks[6]),
    }

    x = jax.random.normal(ks[7], (1, 1, n_state), dtype=jnp.float32)

    ok = True
    for attn_type, t in (("self_attention", dec_len), ("cross_attention", enc_len)):
        k_cache = jax.random.normal(ks[8], (1, t, n_state), dtype=jnp.float32)
        v_cache = jax.random.normal(ks[9], (1, t, n_state), dtype=jnp.float32)

        x_out, k_out, v_out = mha_wrapper_forward(
            x, params, k_cache, v_cache,
            attn_type=attn_type, n_head=n_head, kv_block=8)
        jax.block_until_ready((x_out, k_out, v_out))

        x_ref, k_ref, v_ref = _ref_forward(
            x, params, k_cache, v_cache, attn_type=attn_type, n_head=n_head)

        ok &= (k_out.shape == k_ref.shape) and (v_out.shape == v_ref.shape)
        ok &= bool(jnp.allclose(x_out, x_ref, atol=2e-2, rtol=2e-2))
        ok &= bool(jnp.allclose(k_out.astype(jnp.float32), k_ref, atol=1e-2, rtol=1e-2))
        ok &= bool(jnp.allclose(v_out.astype(jnp.float32), v_ref, atol=1e-2, rtol=1e-2))

    print("KERNEL_OK" if ok else "MISMATCH")
</pallas_src>

<mosaic_0001>
module attributes {stable_mosaic.version = 11 : i64} {
  func.func @kernel(%arg0: i32, %arg1: memref<1x32xf32, #tpu.memory_space<vmem>>, %arg2: memref<32x32xbf16, #tpu.memory_space<vmem>>, %arg3: memref<1x32xf32, #tpu.memory_space<vmem>>, %arg4: memref<32x32xbf16, #tpu.memory_space<vmem>>, %arg5: memref<32x32xbf16, #tpu.memory_space<vmem>>, %arg6: memref<1x32xf32, #tpu.memory_space<vmem>>, %arg7: memref<32x32xbf16, #tpu.memory_space<vmem>>, %arg8: memref<1x32xf32, #tpu.memory_space<vmem>>, %arg9: memref<32x4xf32, #tpu.memory_space<vmem>>, %arg10: memref<4x32xf32, #tpu.memory_space<vmem>>, %arg11: memref<7x32xf32, #tpu.memory_space<vmem>>, %arg12: memref<7x32xf32, #tpu.memory_space<vmem>>, %arg13: memref<1x32xf32, #tpu.memory_space<vmem>>, %arg14: memref<8x32xf32, #tpu.memory_space<vmem>>, %arg15: memref<8x32xf32, #tpu.memory_space<vmem>>) attributes {dimension_semantics = [#tpu.dimension_semantics<arbitrary>], iteration_bounds = array<i64: 1>, scalar_prefetch = 0 : i64, scratch_operands = 0 : i64, tpu.core_type = #tpu.core_type<tc>, window_params = [{pipeline_mode = #tpu.pipeline_mode<synchronous>, transform_indices = @transform_0, window_bounds = array<i64: 1, 32>}, {pipeline_mode = #tpu.pipeline_mode<synchronous>, transform_indices = @transform_1, window_bounds = array<i64: 32, 32>}, {pipeline_mode = #tpu.pipeline_mode<synchronous>, transform_indices = @transform_2, window_bounds = array<i64: 1, 32>}, {pipeline_mode = #tpu.pipeline_mode<synchronous>, transform_indices = @transform_3, window_bounds = array<i64: 32, 32>}, {pipeline_mode = #tpu.pipeline_mode<synchronous>, transform_indices = @transform_4, window_bounds = array<i64: 32, 32>}, {pipeline_mode = #tpu.pipeline_mode<synchronous>, transform_indices = @transform_5, window_bounds = array<i64: 1, 32>}, {pipeline_mode = #tpu.pipeline_mode<synchronous>, transform_indices = @transform_6, window_bounds = array<i64: 32, 32>}, {pipeline_mode = #tpu.pipeline_mode<synchronous>, transform_indices = @transform_7, window_bounds = array<i64: 1, 32>}, {pipeline_mode = #tpu.pipeline_mode<synchronous>, transform_indices = @transform_8, window_bounds = array<i64: 32, 4>}, {pipeline_mode = #tpu.pipeline_mode<synchronous>, transform_indices = @transform_9, window_bounds = array<i64: 4, 32>}, {pipeline_mode = #tpu.pipeline_mode<synchronous>, transform_indices = @transform_10, window_bounds = array<i64: 7, 32>}, {pipeline_mode = #tpu.pipeline_mode<synchronous>, transform_indices = @transform_11, window_bounds = array<i64: 7, 32>}, {pipeline_mode = #tpu.pipeline_mode<synchronous>, transform_indices = @transform_12, window_bounds = array<i64: 1, 32>}, {pipeline_mode = #tpu.pipeline_mode<synchronous>, transform_indices = @transform_13, window_bounds = array<i64: 8, 32>}, {pipeline_mode = #tpu.pipeline_mode<synchronous>, transform_indices = @transform_14, window_bounds = array<i64: 8, 32>}]} {
    %c0 = arith.constant 0 : index
    %c0_0 = arith.constant 0 : index
    %0 = vector.load %arg1[%c0, %c0_0] : memref<1x32xf32, #tpu.memory_space<vmem>>, vector<1x32xf32>
    %1 = arith.truncf %0 : vector<1x32xf32> to vector<1x32xbf16>
    %c0_1 = arith.constant 0 : index
    %c0_2 = arith.constant 0 : index
    %2 = vector.load %arg2[%c0_1, %c0_2] : memref<32x32xbf16, #tpu.memory_space<vmem>>, vector<32x32xbf16>
    %cst = arith.constant dense<0.000000e+00> : vector<1x32xf32>
    %3 = tpu.matmul %1, %2, %cst {dimension_numbers = #tpu.dot_dimension_numbers<[1], [0], [0], [1], [0, 0, 1, 1], [], []>} : vector<1x32xbf16>, vector<32x32xbf16>, vector<1x32xf32> -> vector<1x32xf32>
    %c0_3 = arith.constant 0 : index
    %c0_4 = arith.constant 0 : index
    %4 = vector.load %arg3[%c0_3, %c0_4] : memref<1x32xf32, #tpu.memory_space<vmem>>, vector<1x32xf32>
    %5 = arith.addf %3, %4 : vector<1x32xf32>
    %c0_5 = arith.constant 0 : index
    %c0_6 = arith.constant 0 : index
    %6 = vector.load %arg4[%c0_5, %c0_6] : memref<32x32xbf16, #tpu.memory_space<vmem>>, vector<32x32xbf16>
    %cst_7 = arith.constant dense<0.000000e+00> : vector<1x32xf32>
    %7 = tpu.matmul %1, %6, %cst_7 {dimension_numbers = #tpu.dot_dimension_numbers<[1], [0], [0], [1], [0, 0, 1, 1], [], []>} : vector<1x32xbf16>, vector<32x32xbf16>, vector<1x32xf32> -> vector<1x32xf32>
    %c0_8 = arith.constant 0 : index
    %c0_9 = arith.constant 0 : index
    %8 = vector.load %arg5[%c0_8, %c0_9] : memref<32x32xbf16, #tpu.memory_space<vmem>>, vector<32x32xbf16>
    %cst_10 = arith.constant dense<0.000000e+00> : vector<1x32xf32>
    %9 = tpu.matmul %1, %8, %cst_10 {dimension_numbers = #tpu.dot_dimension_numbers<[1], [0], [0], [1], [0, 0, 1, 1], [], []>} : vector<1x32xbf16>, vector<32x32xbf16>, vector<1x32xf32> -> vector<1x32xf32>
    %c0_11 = arith.constant 0 : index
    %c0_12 = arith.constant 0 : index
    %10 = vector.load %arg6[%c0_11, %c0_12] : memref<1x32xf32, #tpu.memory_space<vmem>>, vector<1x32xf32>
    %11 = arith.addf %9, %10 : vector<1x32xf32>
    %c0_13 = arith.constant 0 : index
    %c0_14 = arith.constant 0 : index
    %12 = vector.load %arg11[%c0_13, %c0_14] : memref<7x32xf32, #tpu.memory_space<vmem>>, vector<7x32xf32>
    %c0_15 = arith.constant 0 : index
    %c0_16 = arith.constant 0 : index
    %13 = vector.load %arg14[%c0_15, %c0_16] : memref<8x32xf32, #tpu.memory_space<vmem>>, vector<7x32xf32>
    tpu.vector_store %arg14[%c0_15, %c0_16], %12 {strides = array<i32>} : memref<8x32xf32, #tpu.memory_space<vmem>>, vector<7x32xf32>,
    %c7 = arith.constant 7 : index
    %c0_17 = arith.constant 0 : index
    %14 = vector.load %arg14[%c7, %c0_17] : memref<8x32xf32, #tpu.memory_space<vmem>>, vector<1x32xf32>
    tpu.vector_store %arg14[%c7, %c0_17], %7 {strides = array<i32>} : memref<8x32xf32, #tpu.memory_space<vmem>>, vector<1x32xf32>,
    %c0_18 = arith.constant 0 : index
    %c0_19 = arith.constant 0 : index
    %15 = vector.load %arg12[%c0_18, %c0_19] : memref<7x32xf32, #tpu.memory_space<vmem>>, vector<7x32xf32>
    %c0_20 = arith.constant 0 : index
    %c0_21 = arith.constant 0 : index
    %16 = vector.load %arg15[%c0_20, %c0_21] : memref<8x32xf32, #tpu.memory_space<vmem>>, vector<7x32xf32>
    tpu.vector_store %arg15[%c0_20, %c0_21], %15 {strides = array<i32>} : memref<8x32xf32, #tpu.memory_space<vmem>>, vector<7x32xf32>,
    %c7_22 = arith.constant 7 : index
    %c0_23 = arith.constant 0 : index
    %17 = vector.load %arg15[%c7_22, %c0_23] : memref<8x32xf32, #tpu.memory_space<vmem>>, vector<1x32xf32>
    tpu.vector_store %arg15[%c7_22, %c0_23], %11 {strides = array<i32>} : memref<8x32xf32, #tpu.memory_space<vmem>>, vector<1x32xf32>,
    %c0_24 = arith.constant 0 : index
    %c0_25 = arith.constant 0 : index
    %18 = vector.load %arg14[%c0_24, %c0_25] : memref<8x32xf32, #tpu.memory_space<vmem>>, vector<8x32xf32>
    %c0_26 = arith.constant 0 : index
    %c0_27 = arith.constant 0 : index
    %19 = vector.load %arg15[%c0_26, %c0_27] : memref<8x32xf32, #tpu.memory_space<vmem>>, vector<8x32xf32>
    %cst_28 = arith.constant 0.353553385 : f32
    %20 = vector.broadcast %cst_28 : f32 to vector<1x32xf32>
    %21 = arith.mulf %5, %20 : vector<1x32xf32>
    %22 = vector.broadcast %21 : vector<1x32xf32> to vector<8x32xf32>
    %23 = arith.mulf %22, %18 : vector<8x32xf32>
    %c0_29 = arith.constant 0 : index
    %c0_30 = arith.constant 0 : index
    %24 = vector.load %arg9[%c0_29, %c0_30] : memref<32x4xf32, #tpu.memory_space<vmem>>, vector<32x4xf32>
    %cst_31 = arith.constant dense<0.000000e+00> : vector<8x4xf32>
    %25 = tpu.matmul %23, %24, %cst_31 {dimension_numbers = #tpu.dot_dimension_numbers<[1], [0], [0], [1], [0, 0, 1, 1], [], []>} : vector<8x32xf32>, vector<32x4xf32>, vector<8x4xf32> -> vector<8x4xf32>
    %cst_32 = arith.constant dense<0xFF800000> : vector<4xf32>
    %26 = vector.multi_reduction <maximumf>, %25, %cst_32 [0] : vector<8x4xf32> to vector<4xf32>
    %27 = vector.shape_cast %26 : vector<4xf32> to vector<1x4xf32>
    %28 = vector.broadcast %27 : vector<1x4xf32> to vector<8x4xf32>
    %29 = arith.subf %25, %28 : vector<8x4xf32>
    %30 = math.exp %29 : vector<8x4xf32>
    %cst_33 = arith.constant 1.000000e+00 : f32
    %31 = vector.broadcast %cst_33 : f32 to vector<1x8xf32>
    %cst_34 = arith.constant dense<0.000000e+00> : vector<1x4xf32>
    %32 = tpu.matmul %31, %30, %cst_34 {dimension_numbers = #tpu.dot_dimension_numbers<[1], [0], [0], [1], [0, 0, 1, 1], [], []>} : vector<1x8xf32>, vector<8x4xf32>, vector<1x4xf32> -> vector<1x4xf32>
    %33 = tpu.reciprocal %32 {approx = true} : vector<1x4xf32> -> vector<1x4xf32>
    %c0_35 = arith.constant 0 : index
    %c0_36 = arith.constant 0 : index
    %34 = vector.load %arg10[%c0_35, %c0_36] : memref<4x32xf32, #tpu.memory_space<vmem>>, vector<4x32xf32>
    %cst_37 = arith.constant dense<0.000000e+00> : vector<8x32xf32>
    %35 = tpu.matmul %30, %34, %cst_37 {dimension_numbers = #tpu.dot_dimension_numbers<[1], [0], [0], [1], [0, 0, 1, 1], [], []>} : vector<8x4xf32>, vector<4x32xf32>, vector<8x32xf32> -> vector<8x32xf32>
    %36 = arith.mulf %35, %19 : vector<8x32xf32>
    %cst_38 = arith.constant dense<0.000000e+00> : vector<1x32xf32>
    %37 = tpu.matmul %31, %36, %cst_38 {dimension_numbers = #tpu.dot_dimension_numbers<[1], [0], [0], [1], [0, 0, 1, 1], [], []>} : vector<1x8xf32>, vector<8x32xf32>, vector<1x32xf32> -> vector<1x32xf32>
    %c0_39 = arith.constant 0 : index
    %c0_40 = arith.constant 0 : index
    %38 = vector.load %arg10[%c0_39, %c0_40] : memref<4x32xf32, #tpu.memory_space<vmem>>, vector<4x32xf32>
    %cst_41 = arith.constant dense<0.000000e+00> : vector<1x32xf32>
    %39 = tpu.matmul %33, %38, %cst_41 {dimension_numbers = #tpu.dot_dimension_numbers<[1], [0], [0], [1], [0, 0, 1, 1], [], []>} : vector<1x4xf32>, vector<4x32xf32>, vector<1x32xf32> -> vector<1x32xf32>
    %40 = arith.mulf %37, %39 : vector<1x32xf32>
    %41 = arith.truncf %40 : vector<1x32xf32> to vector<1x32xbf16>
    %c0_42 = arith.constant 0 : index
    %c0_43 = arith.constant 0 : index
    %42 = vector.load %arg7[%c0_42, %c0_43] : memref<32x32xbf16, #tpu.memory_space<vmem>>, vector<32x32xbf16>
    %cst_44 = arith.constant dense<0.000000e+00> : vector<1x32xf32>
    %43 = tpu.matmul %41, %42, %cst_44 {dimension_numbers = #tpu.dot_dimension_numbers<[1], [0], [0], [1], [0, 0, 1, 1], [], []>} : vector<1x32xbf16>, vector<32x32xbf16>, vector<1x32xf32> -> vector<1x32xf32>
    %c0_45 = arith.constant 0 : index
    %c0_46 = arith.constant 0 : index
    %44 = vector.load %arg8[%c0_45, %c0_46] : memref<1x32xf32, #tpu.memory_space<vmem>>, vector<1x32xf32>
    %45 = arith.addf %43, %44 : vector<1x32xf32>
    %c0_47 = arith.constant 0 : index
    %c0_48 = arith.constant 0 : index
    %46 = vector.load %arg13[%c0_47, %c0_48] : memref<1x32xf32, #tpu.memory_space<vmem>>, vector<1x32xf32>
    tpu.vector_store %arg13[%c0_47, %c0_48], %45 {strides = array<i32>} : memref<1x32xf32, #tpu.memory_space<vmem>>, vector<1x32xf32>,
    return
  }
  func.func @transform_0(%arg0: i32) -> (i32, i32) {
    %c0_i32 = arith.constant 0 : i32
    %c0_i32_0 = arith.constant 0 : i32
    %c0_i32_1 = arith.constant 0 : i32
    return %c0_i32, %c0_i32_0 : i32, i32
  }
  func.func @transform_1(%arg0: i32) -> (i32, i32) {
    %c0_i32 = arith.constant 0 : i32
    %c0_i32_0 = arith.constant 0 : i32
    %c0_i32_1 = arith.constant 0 : i32
    return %c0_i32, %c0_i32_0 : i32, i32
  }
  func.func @transform_2(%arg0: i32) -> (i32, i32) {
    %c0_i32 = arith.constant 0 : i32
    %c0_i32_0 = arith.constant 0 : i32
    %c0_i32_1 = arith.constant 0 : i32
    return %c0_i32, %c0_i32_0 : i32, i32
  }
  func.func @transform_3(%arg0: i32) -> (i32, i32) {
    %c0_i32 = arith.constant 0 : i32
    %c0_i32_0 = arith.constant 0 : i32
    %c0_i32_1 = arith.constant 0 : i32
    return %c0_i32, %c0_i32_0 : i32, i32
  }
  func.func @transform_4(%arg0: i32) -> (i32, i32) {
    %c0_i32 = arith.constant 0 : i32
    %c0_i32_0 = arith.constant 0 : i32
    %c0_i32_1 = arith.constant 0 : i32
    return %c0_i32, %c0_i32_0 : i32, i32
  }
  func.func @transform_5(%arg0: i32) -> (i32, i32) {
    %c0_i32 = arith.constant 0 : i32
    %c0_i32_0 = arith.constant 0 : i32
    %c0_i32_1 = arith.constant 0 : i32
    return %c0_i32, %c0_i32_0 : i32, i32
  }
  func.func @transform_6(%arg0: i32) -> (i32, i32) {
    %c0_i32 = arith.constant 0 : i32
    %c0_i32_0 = arith.constant 0 : i32
    %c0_i32_1 = arith.constant 0 : i32
    return %c0_i32, %c0_i32_0 : i32, i32
  }
  func.func @transform_7(%arg0: i32) -> (i32, i32) {
    %c0_i32 = arith.constant 0 : i32
    %c0_i32_0 = arith.constant 0 : i32
    %c0_i32_1 = arith.constant 0 : i32
    return %c0_i32, %c0_i32_0 : i32, i32
  }
  func.func @transform_8(%arg0: i32) -> (i32, i32) {
    %c0_i32 = arith.constant 0 : i32
    %c0_i32_0 = arith.constant 0 : i32
    %c0_i32_1 = arith.constant 0 : i32
    return %c0_i32, %c0_i32_0 : i32, i32
  }
  func.func @transform_9(%arg0: i32) -> (i32, i32) {
    %c0_i32 = arith.constant 0 : i32
    %c0_i32_0 = arith.constant 0 : i32
    %c0_i32_1 = arith.constant 0 : i32
    return %c0_i32, %c0_i32_0 : i32, i32
  }
  func.func @transform_10(%arg0: i32) -> (i32, i32) {
    %c0_i32 = arith.constant 0 : i32
    %c0_i32_0 = arith.constant 0 : i32
    %c0_i32_1 = arith.constant 0 : i32
    return %c0_i32, %c0_i32_0 : i32, i32
  }
  func.func @transform_11(%arg0: i32) -> (i32, i32) {
    %c0_i32 = arith.constant 0 : i32
    %c0_i32_0 = arith.constant 0 : i32
    %c0_i32_1 = arith.constant 0 : i32
    return %c0_i32, %c0_i32_0 : i32, i32
  }
  func.func @transform_12(%arg0: i32) -> (i32, i32) {
    %c0_i32 = arith.constant 0 : i32
    %c0_i32_0 = arith.constant 0 : i32
    %c0_i32_1 = arith.constant 0 : i32
    return %c0_i32, %c0_i32_0 : i32, i32
  }
  func.func @transform_13(%arg0: i32) -> (i32, i32) {
    %c0_i32 = arith.constant 0 : i32
    %c0_i32_0 = arith.constant 0 : i32
    %c0_i32_1 = arith.constant 0 : i32
    return %c0_i32, %c0_i32_0 : i32, i32
  }
  func.func @transform_14(%arg0: i32) -> (i32, i32) {
    %c0_i32 = arith.constant 0 : i32
    %c0_i32_0 = arith.constant 0 : i32
    %c0_i32_1 = arith.constant 0 : i32
    return %c0_i32, %c0_i32_0 : i32, i32
  }
}

</mosaic_0001>

<bundles_post_ra>
// kernel: mha_wrapper_forward.1
= control target key start
LH: loop header
LB: loop body
LE: loop exit
PB: predicated region body
PF: predicated region fallthrough
CT: control target
= control target key end

     0   :  { %20 = vsyncpa [#allocation3], 0  ;;  %s1717_s0 = inlined_call_operand.hbm [shape: f32[1,32], index: 0, kind: input, shape index: {}]   ;;  %s1718_s1 = inlined_call_operand.hbm [shape: bf16[32,32], index: 1, kind: input, shape index: {}]   ;;  %s1719_s2 = inlined_call_operand.hbm [shape: f32[1,32], index: 2, kind: input, shape index: {}]   ;;  %s1720_s3 = inlined_call_operand.hbm [shape: bf16[32,32], index: 3, kind: input, shape index: {}]   ;;  %s1721_s4 = inlined_call_operand.hbm [shape: bf16[32,32], index: 4, kind: input, shape index: {}]   ;;  %s1722_s5 = inlined_call_operand.hbm [shape: f32[1,32], index: 5, kind: input, shape index: {}]   ;;  %s1723_s6 = inlined_call_operand.hbm [shape: bf16[32,32], index: 6, kind: input, shape index: {}]   ;;  %s1724_s7 = inlined_call_operand.hbm [shape: f32[1,32], index: 7, kind: input, shape index: {}]   ;;  %s1725_s8 = inlined_call_operand.hbm [shape: f32[32,4], index: 8, kind: input, shape index: {}]   ;;  %s1726_s9 = inlined_call_operand.hbm [shape: f32[4,32], index: 9, kind: input, shape index: {}]   ;;  %s1727_s10 = inlined_call_operand.hbm [shape: f32[7,32], index: 10, kind: input, shape index: {}]   ;;  %s1728_s11 = inlined_call_operand.hbm [shape: f32[7,32], index: 11, kind: input, shape index: {}]   ;;  %s1729_s12 = inlined_call_operand.hbm [shape: f32[1,32], index: 12, kind: output, shape index: {0}]   ;;  %s1730_s13 = inlined_call_operand.hbm [shape: f32[8,32], index: 13, kind: output, shape index: {1}]   ;;  %s1731_s14 = inlined_call_operand.hbm [shape: f32[8,32], index: 14, kind: output, shape index: {2}]  }
   0x1   :  { %21 = vsyncpa [#allocation6], 0 }
   0x2   :  { %22 = vsyncpa [#allocation9], 0 }
   0x3   :  { %23 = vsyncpa [#allocation12], 0 }
   0x4   :  { %24 = vsyncpa [#allocation15], 0 }
   0x5   :  { %25 = vsyncpa [#allocation18], 0 }
   0x6   :  { %26 = vsyncpa [#allocation21], 0 }
   0x7   :  { %27 = vsyncpa [#allocation4], 0 }
   0x8   :  { %28 = vsyncpa [#allocation24], 0  ;;  %s1380_s29 = smov [#allocation5]   ;;  %s1032_s17 = scalar_lea.hbm %s1718_s1, 256 }
   0x9   :  { %s44_s30 = sshll.u32 %s1380_s29, 4  ;;  %p1033_p0 = scmp.ne.s32.totalorder %s1718_s1, %s1032_s17  ;;  %s45_s30 = int_to_ptr.vmem [resolvable:$true] %s44_s30 }
   0xa   :  { %p1036_p1 = scmp.lt.u32.totalorder %s1032_s17, %s1718_s1 }
   0xc   :  { %p1038_p2 = pnand %p1036_p1, %p1033_p0 }
   0xe   :  { %1041 = shalt.err (!%p1038_p2)
}
   0xf   :  { %s1042_s22 = scalar_lea.vmem %s45_s30, 256  ;;  %p1047_p4 = scmp.lt.s32.totalorder %s45_s30, %s45_s30 }
  0x10   :  { %p1043_p3 = scmp.ne.s32.totalorder %s45_s30, %s1042_s22  ;;  %p1048_p5 = scmp.lt.s32.totalorder %s1042_s22, %s1042_s22 }
  0x12   :  { %p1049_p6 = por %p1048_p5, %p1047_p4 }
  0x14   :  { %p1050_p7 = pnand %p1049_p6, %p1043_p3 }
  0x16   :  { %1053 = shalt.err (!%p1050_p7)
}
  0x17   :  { %s1381_s23 = smov 64   ;;  %s1382_s24 = smov 4  }
  0x18   :  { %50 = dma.hbm_to_vmem [thread:$0]  %s1718_s1, 256, %s45_s30, [#allocation6], %s1381_s23, %s1381_s23, %s1382_s24  }
  0x19   :  { %s1383_s27 = smov [#allocation8]   ;;  %s1384_s29 = smov [#allocation11]  }
  0x1a   :  { %s66_s28 = sshll.u32 %s1383_s27, 4  ;;  %s91_s15 = sshll.u32 %s1384_s29, 4  ;;  %s67_s28 = int_to_ptr.vmem [resolvable:$true] %s66_s28  ;;  %s92_s15 = int_to_ptr.vmem [resolvable:$true] %s91_s15 }
  0x1b   :  { %s1054_s18 = scalar_lea.hbm %s1720_s3, 256 }
  0x1c   :  { %p1055_p8 = scmp.ne.s32.totalorder %s1720_s3, %s1054_s18  ;;  %p1058_p9 = scmp.lt.u32.totalorder %s1054_s18, %s1720_s3 }
  0x1e   :  { %p1060_p10 = pnand %p1058_p9, %p1055_p8 }
  0x20   :  { %1063 = shalt.err (!%p1060_p10)
}
  0x21   :  { %s1064_s1 = scalar_lea.vmem %s67_s28, 256  ;;  %p1069_p12 = scmp.lt.s32.totalorder %s67_s28, %s67_s28 }
  0x22   :  { %p1065_p11 = scmp.ne.s32.totalorder %s67_s28, %s1064_s1  ;;  %p1070_p13 = scmp.lt.s32.totalorder %s1064_s1, %s1064_s1 }
  0x24   :  { %p1071_p0 = por %p1070_p13, %p1069_p12 }
  0x26   :  { %p1072_p1 = pnand %p1071_p0, %p1065_p11 }
  0x28   :  { %1075 = shalt.err (!%p1072_p1)
}
  0x29   :  { %72 = dma.hbm_to_vmem [thread:$0]  %s1720_s3, 256, %s67_s28, [#allocation9], %s1381_s23, %s1381_s23, %s1382_s24  }
  0x2a   :  { %s1076_s29 = scalar_lea.hbm %s1722_s5, 16 }
  0x2b   :  { %p1077_p2 = scmp.ne.s32.totalorder %s1722_s5, %s1076_s29  ;;  %p1080_p3 = scmp.lt.u32.totalorder %s1076_s29, %s1722_s5 }
  0x2d   :  { %p1082_p4 = pnand %p1080_p3, %p1077_p2 }
  0x2f   :  { %1085 = shalt.err (!%p1082_p4)
}
  0x30   :  { %s1086_s20 = scalar_lea.vmem %s92_s15, 16  ;;  %s1090_s21 = scalar_lea.vmem %s92_s15, 32 }
  0x31   :  { %p1087_p5 = scmp.ne.s32.totalorder %s92_s15, %s1086_s20  ;;  %p1091_p6 = scmp.lt.s32.totalorder %s92_s15, %s92_s15 }
  0x32   :  { %p1092_p7 = scmp.lt.s32.totalorder %s1090_s21, %s1086_s20 }
  0x34   :  { %p1093_p8 = por %p1092_p7, %p1091_p6 }
  0x36   :  { %p1094_p9 = pnand %p1093_p8, %p1087_p5 }
  0x38   :  { %1097 = shalt.err (!%p1094_p9)
}
  0x39   :  { %94 = dma.hbm_to_vmem [thread:$0]  %s1722_s5, 16, %s92_s15, [#allocation12]  }
  0x3a   :  { %s1385_s22 = smov [#allocation14]   ;;  %s1386_s30 = smov [#allocation17]  }
  0x3b   :  { %s113_s1 = sshll.u32 %s1385_s22, 4  ;;  %s135_s25 = sshll.u32 %s1386_s30, 4  ;;  %s114_s1 = int_to_ptr.vmem [resolvable:$true] %s113_s1  ;;  %s136_s25 = int_to_ptr.vmem [resolvable:$true] %s135_s25 }
  0x3c   :  { %s1098_s29 = scalar_lea.hbm %s1724_s7, 16 }
  0x3d   :  { %p1099_p10 = scmp.ne.s32.totalorder %s1724_s7, %s1098_s29  ;;  %p1102_p11 = scmp.lt.u32.totalorder %s1098_s29, %s1724_s7 }
  0x3f   :  { %p1104_p12 = pnand %p1102_p11, %p1099_p10 }
  0x41   :  { %1107 = shalt.err (!%p1104_p12)
}
  0x42   :  { %s1108_s5 = scalar_lea.vmem %s114_s1, 16  ;;  %s1112_s15 = scalar_lea.vmem %s114_s1, 32 }
  0x43   :  { %p1109_p13 = scmp.ne.s32.totalorder %s114_s1, %s1108_s5  ;;  %p1113_p0 = scmp.lt.s32.totalorder %s114_s1, %s114_s1 }
  0x44   :  { %p1114_p1 = scmp.lt.s32.totalorder %s1112_s15, %s1108_s5 }
  0x46   :  { %p1115_p2 = por %p1114_p1, %p1113_p0 }
  0x48   :  { %p1116_p3 = pnand %p1115_p2, %p1109_p13 }
  0x4a   :  { %1119 = shalt.err (!%p1116_p3)
}
  0x4b   :  { %116 = dma.hbm_to_vmem [thread:$0]  %s1724_s7, 16, %s114_s1, [#allocation15]  }
  0x4c   :  { %s1120_s22 = scalar_lea.hbm %s1726_s9, 64 }
  0x4d   :  { %p1121_p4 = scmp.ne.s32.totalorder %s1726_s9, %s1120_s22  ;;  %p1124_p5 = scmp.lt.u32.totalorder %s1120_s22, %s1726_s9 }
  0x4f   :  { %p1126_p6 = pnand %p1124_p5, %p1121_p4 }
  0x51   :  { %1129 = shalt.err (!%p1126_p6)
}
  0x52   :  { %s1130_s16 = scalar_lea.vmem %s136_s25, 64  ;;  %p1135_p8 = scmp.lt.s32.totalorder %s136_s25, %s136_s25 }
  0x53   :  { %p1131_p7 = scmp.ne.s32.totalorder %s136_s25, %s1130_s16  ;;  %p1136_p9 = scmp.lt.s32.totalorder %s1130_s16, %s1130_s16 }
  0x55   :  { %p1137_p10 = por %p1136_p9, %p1135_p8 }
  0x57   :  { %p1138_p11 = pnand %p1137_p10, %p1131_p7 }
  0x59   :  { %1141 = shalt.err (!%p1138_p11)
}
  0x5a   :  { %138 = dma.hbm_to_vmem [thread:$0]  %s1726_s9, 64, %s136_s25, [#allocation18]  }
  0x5b   :  { %s1387_s17 = smov [#allocation2]   ;;  %s1388_s19 = smov [#allocation7]  }
  0x5c   :  { %s35_s18 = sshll.u32 %s1387_s17, 4  ;;  %s57_s5 = sshll.u32 %s1388_s19, 4  ;;  %s36_s18 = int_to_ptr.vmem [resolvable:$true] %s35_s18  ;;  %s58_s5 = int_to_ptr.vmem [resolvable:$true] %s57_s5 }
  0x5d   :  { %s1142_s21 = scalar_lea.hbm %s1717_s0, 16 }
  0x5e   :  { %p1143_p12 = scmp.ne.s32.totalorder %s1717_s0, %s1142_s21  ;;  %p1146_p13 = scmp.lt.u32.totalorder %s1142_s21, %s1717_s0 }
  0x60   :  { %p1148_p0 = pnand %p1146_p13, %p1143_p12 }
  0x62   :  { %1151 = shalt.err (!%p1148_p0)
}
  0x63   :  { %s1152_s9 = scalar_lea.vmem %s36_s18, 16  ;;  %s1156_s25 = scalar_lea.vmem %s36_s18, 32 }
  0x64   :  { %p1153_p1 = scmp.ne.s32.totalorder %s36_s18, %s1152_s9  ;;  %p1157_p2 = scmp.lt.s32.totalorder %s36_s18, %s36_s18 }
  0x65   :  { %p1158_p3 = scmp.lt.s32.totalorder %s1156_s25, %s1152_s9 }
  0x67   :  { %p1159_p4 = por %p1158_p3, %p1157_p2 }
  0x69   :  { %p1160_p5 = pnand %p1159_p4, %p1153_p1 }
  0x6b   :  { %1163 = shalt.err (!%p1160_p5)
}
  0x6c   :  { %38 = dma.hbm_to_vmem [thread:$0]  %s1717_s0, 16, %s36_s18, [#allocation3]  }
  0x6d   :  { %s1164_s7 = scalar_lea.hbm %s1719_s2, 16 }
  0x6e   :  { %p1165_p6 = scmp.ne.s32.totalorder %s1719_s2, %s1164_s7  ;;  %p1168_p7 = scmp.lt.u32.totalorder %s1164_s7, %s1719_s2 }
  0x70   :  { %p1170_p8 = pnand %p1168_p7, %p1165_p6 }
  0x72   :  { %1173 = shalt.err (!%p1170_p8)
}
  0x73   :  { %s1174_s20 = scalar_lea.vmem %s58_s5, 16  ;;  %s1178_s21 = scalar_lea.vmem %s58_s5, 32 }
  0x74   :  { %p1175_p9 = scmp.ne.s32.totalorder %s58_s5, %s1174_s20  ;;  %p1179_p10 = scmp.lt.s32.totalorder %s58_s5, %s58_s5 }
  0x75   :  { %p1180_p11 = scmp.lt.s32.totalorder %s1178_s21, %s1174_s20 }
  0x77   :  { %p1181_p12 = por %p1180_p11, %p1179_p10 }
  0x79   :  { %p1182_p13 = pnand %p1181_p12, %p1175_p9 }
  0x7b   :  { %1185 = shalt.err (!%p1182_p13)
}
  0x7c   :  { %60 = dma.hbm_to_vmem [thread:$0]  %s1719_s2, 16, %s58_s5, [#allocation6]  }
  0x7d   :  { %s1389_s3 = smov [#allocation10]   ;;  %s1390_s22 = smov [#allocation13]  }
  0x7e   :  { %s78_s28 = sshll.u32 %s1389_s3, 4  ;;  %s100_s30 = sshll.u32 %s1390_s22, 4  ;;  %s79_s28 = int_to_ptr.vmem [resolvable:$true] %s78_s28  ;;  %s101_s30 = int_to_ptr.vmem [resolvable:$true] %s100_s30 }
  0x7f   :  { %s1186_s26 = scalar_lea.hbm %s1721_s4, 256 }
  0x80   :  { %p1187_p0 = scmp.ne.s32.totalorder %s1721_s4, %s1186_s26  ;;  %p1190_p1 = scmp.lt.u32.totalorder %s1186_s26, %s1721_s4 }
  0x82   :  { %p1192_p2 = pnand %p1190_p1, %p1187_p0 }
  0x84   :  { %1195 = shalt.err (!%p1192_p2)
}
  0x85   :  { %s1196_s2 = scalar_lea.vmem %s79_s28, 256  ;;  %p1201_p4 = scmp.lt.s32.totalorder %s79_s28, %s79_s28 }
  0x86   :  { %p1197_p3 = scmp.ne.s32.totalorder %s79_s28, %s1196_s2  ;;  %p1202_p5 = scmp.lt.s32.totalorder %s1196_s2, %s1196_s2 }
  0x88   :  { %p1203_p6 = por %p1202_p5, %p1201_p4 }
  0x8a   :  { %p1204_p7 = pnand %p1203_p6, %p1197_p3 }
  0x8c   :  { %1207 = shalt.err (!%p1204_p7)
}
  0x8d   :  { %84 = dma.hbm_to_vmem [thread:$0]  %s1721_s4, 256, %s79_s28, [#allocation9], %s1381_s23, %s1381_s23, %s1382_s24  }
  0x8e   :  { %s1208_s15 = scalar_lea.hbm %s1723_s6, 256 }
  0x8f   :  { %p1209_p8 = scmp.ne.s32.totalorder %s1723_s6, %s1208_s15  ;;  %p1212_p9 = scmp.lt.u32.totalorder %s1208_s15, %s1723_s6 }
  0x91   :  { %p1214_p10 = pnand %p1212_p9, %p1209_p8 }
  0x93   :  { %1217 = shalt.err (!%p1214_p10)
}
  0x94   :  { %s1218_s3 = scalar_lea.vmem %s101_s30, 256  ;;  %p1223_p12 = scmp.lt.s32.totalorder %s101_s30, %s101_s30 }
  0x95   :  { %p1219_p11 = scmp.ne.s32.totalorder %s101_s30, %s1218_s3  ;;  %p1224_p13 = scmp.lt.s32.totalorder %s1218_s3, %s1218_s3 }
  0x97   :  { %p1225_p0 = por %p1224_p13, %p1223_p12 }
  0x99   :  { %p1226_p1 = pnand %p1225_p0, %p1219_p11 }
  0x9b   :  { %1229 = shalt.err (!%p1226_p1)
}
  0x9c   :  { %106 = dma.hbm_to_vmem [thread:$0]  %s1723_s6, 256, %s101_s30, [#allocation12], %s1381_s23, %s1381_s23, %s1382_s24  }
  0x9d   :  { %s1391_s22 = smov [#allocation16]   ;;  %s1230_s27 = scalar_lea.hbm %s1725_s8, 512 }
  0x9e   :  { %s122_s9 = sshll.u32 %s1391_s22, 4  ;;  %p1231_p2 = scmp.ne.s32.totalorder %s1725_s8, %s1230_s27  ;;  %s123_s9 = int_to_ptr.vmem [resolvable:$true] %s122_s9 }
  0x9f   :  { %p1234_p3 = scmp.lt.u32.totalorder %s1230_s27, %s1725_s8 }
  0xa1   :  { %p1236_p4 = pnand %p1234_p3, %p1231_p2 }
  0xa3   :  { %1239 = shalt.err (!%p1236_p4)
}
  0xa4   :  { %s1240_s5 = scalar_lea.vmem %s123_s9, 512  ;;  %p1245_p6 = scmp.lt.s32.totalorder %s123_s9, %s123_s9 }
  0xa5   :  { %p1241_p5 = scmp.ne.s32.totalorder %s123_s9, %s1240_s5  ;;  %p1246_p7 = scmp.lt.s32.totalorder %s1240_s5, %s1240_s5 }
  0xa7   :  { %p1247_p8 = por %p1246_p7, %p1245_p6 }
  0xa9   :  { %p1248_p9 = pnand %p1247_p8, %p1241_p5 }
  0xab   :  { %1251 = shalt.err (!%p1248_p9)
}
  0xac   :  { %s1392_s6 = smov 128   ;;  %s1393_s23 = smov 8  }
  0xad   :  { %128 = dma.hbm_to_vmem [thread:$0]  %s1725_s8, 512, %s123_s9, [#allocation15], %s1392_s6, %s1392_s6, %s1393_s23  }
  0xae   :  { %s1394_s1 = smov [#allocation19]   ;;  %s1395_s19 = smov [#allocation20]  }
  0xaf   :  { %s145_s17 = sshll.u32 %s1394_s1, 4  ;;  %s155_s15 = sshll.u32 %s1395_s19, 4  ;;  %s146_s17 = int_to_ptr.vmem [resolvable:$true] %s145_s17  ;;  %s156_s15 = int_to_ptr.vmem [resolvable:$true] %s155_s15 }
  0xb0   :  { %s1252_s0 = scalar_lea.hbm %s1727_s10, 128 }
  0xb1   :  { %p1253_p10 = scmp.ne.s32.totalorder %s1727_s10, %s1252_s0  ;;  %p1256_p11 = scmp.lt.u32.totalorder %s1252_s0, %s1727_s10 }
  0xb3   :  { %p1258_p12 = pnand %p1256_p11, %p1253_p10 }
  0xb5   :  { %1261 = shalt.err (!%p1258_p12)
}
  0xb6   :  { %s1262_s8 = scalar_lea.vmem %s146_s17, 128  ;;  %p1267_p0 = scmp.lt.s32.totalorder %s146_s17, %s146_s17 }
  0xb7   :  { %p1263_p13 = scmp.ne.s32.totalorder %s146_s17, %s1262_s8  ;;  %p1268_p1 = scmp.lt.s32.totalorder %s1262_s8, %s1262_s8 }
  0xb9   :  { %p1269_p2 = por %p1268_p1, %p1267_p0 }
  0xbb   :  { %p1270_p3 = pnand %p1269_p2, %p1263_p13 }
  0xbd   :  { %1273 = shalt.err (!%p1270_p3)
}
  0xbe   :  { %148 = dma.hbm_to_vmem [thread:$0]  %s1727_s10, 128, %s146_s17, [#allocation18]  }
  0xbf   :  { %s1274_s27 = scalar_lea.hbm %s1728_s11, 128 }
  0xc0   :  { %p1275_p4 = scmp.ne.s32.totalorder %s1728_s11, %s1274_s27  ;;  %p1278_p5 = scmp.lt.u32.totalorder %s1274_s27, %s1728_s11 }
  0xc2   :  { %p1280_p6 = pnand %p1278_p5, %p1275_p4 }
  0xc4   :  { %1283 = shalt.err (!%p1280_p6)
}
  0xc5   :  { %s1284_s5 = scalar_lea.vmem %s156_s15, 128  ;;  %p1289_p8 = scmp.lt.s32.totalorder %s156_s15, %s156_s15 }
  0xc6   :  { %p1285_p7 = scmp.ne.s32.totalorder %s156_s15, %s1284_s5  ;;  %p1290_p9 = scmp.lt.s32.totalorder %s1284_s5, %s1284_s5 }
  0xc8   :  { %p1291_p10 = por %p1290_p9, %p1289_p8 }
  0xca   :  { %p1292_p11 = pnand %p1291_p10, %p1285_p7 }
  0xcc   :  { %1295 = shalt.err (!%p1292_p11)
}
  0xcd   :  { %158 = dma.hbm_to_vmem [thread:$0]  %s1728_s11, 128, %s156_s15, [#allocation21]  }
  0xce   :  { %1362 = dma.done.wait [#allocation3], 16  }
  0xcf   :  { %1363 = vsyncadd [#allocation3], 4294967280 }
  0xd0   :  { %1364 = dma.done.wait [#allocation6], 272  }
  0xd1   :  { %1365 = vsyncadd [#allocation6], 4294967024 }
  0xd2   :  { %1366 = dma.done.wait [#allocation9], 512  }
  0xd3   :  { %1367 = vsyncadd [#allocation9], 4294966784 }
  0xd4   :  { %1368 = dma.done.wait [#allocation12], 272  }
  0xd5   :  { %1369 = vsyncadd [#allocation12], 4294967024 }
  0xd6   :  { %1370 = dma.done.wait [#allocation15], 528  }
  0xd7   :  { %1371 = vsyncadd [#allocation15], 4294966768 }
  0xd8   :  { %1372 = dma.done.wait [#allocation18], 192  }
  0xd9   :  { %1373 = vsyncadd [#allocation18], 4294967104 }
  0xda   :  { %1374 = dma.done.wait [#allocation21], 128  }
  0xdb   :  { %1375 = vsyncadd [#allocation21], 4294967168  ;;  %v1396_v0 = vmov 0.0   ;;  %vm1397_vm0 = vmmov 0   ;;  %v1020_v1 = vld [vmem:[#allocation5] sm:$0xff]   ;;  %v1021_v2 = vld [vmem:[#allocation8] sm:$0xff]   ;;  %v383_v17 = vlaneseq }
  0xdc   :  { %928 = vmatprep.subr.bf16.mxu0 %v1396_v0  ;;  %936 = vmatprep.subr.bf16.mxu1 %v1396_v0  ;;  %v1022_v3 = vld [vmem:[#allocation5 + $0x8] sm:$0xff]   ;;  %v1023_v4 = vld [vmem:[#allocation8 + $0x8] sm:$0xff]   ;;  %vm215_vm1 = vcmask 261120   ;;  %vm373_vm2 = vcmask 260096   ;;  %v1398_v13 = vmov 0.0|0.0   ;;  %vm375_vm3 = vcmask 253952  }
  0xdd   :  { %932 = vmatprep.mubr.msk.bf16.mxu0 %vm1397_vm0, %v1396_v0  ;;  %940 = vmatprep.mubr.msk.bf16.mxu1 %vm1397_vm0, %v1396_v0  ;;  %v196_v5 = vld [vmem:[#allocation2] sm:$0x1]  ;;  %v1024_v7 = vld [vmem:[#allocation10] sm:$0xff]   ;;  %v1025_v8 = vld [vmem:[#allocation10 + $0x8] sm:$0xff]   ;;  %v384_v19 = vshrl.u32 %v383_v17, 7  ;;  %vm555_vm4 = vcmask 1043456  }
  0xde   :  { %929 = vmatpush3.bf16.msra.mxu0 %v1020_v1  ;;  %937 = vmatpush3.bf16.msra.mxu1 %v1021_v2  ;;  %v197_v6 = vpack.c.bf16 %v196_v5, %v196_v5  ;;  %v372_v9 = vld [vmem:[#allocation19] sm:$0x7f]  ;;  %v390_v14 = vld [vmem:[#allocation16 + $0x10] sm:$0xff]  ;;  %v391_v15 = vld [vmem:[#allocation16 + $0x18] sm:$0xff]  ;;  %vm465_vm5 = vcmask 31744   ;;  %vm476_vm6 = vcmask 64512  }
  0xdf   :  { %930 = vmatprep.subr.bf16.mxu0 %v1396_v0  ;;  %938 = vmatprep.subr.bf16.mxu1 %v1396_v0  ;;  %v388_v10 = vld [vmem:[#allocation16] sm:$0xff]  ;;  %v389_v11 = vld [vmem:[#allocation16 + $0x8] sm:$0xff]  ;;  %374 = vst.msk [vmem:[#allocation23] sm:$0x7f] %vm373_vm2, %v372_v9  ;;  %v995_v16 = vpack.c.bf16 %v391_v15, %v390_v14  ;;  %v385_v24 = vsub.s32 0, %v384_v19  ;;  %v1399_v54 = vmov 1.0  }
  0xe0   :  { %v992_v12 = vpack.c.bf16 %v389_v11, %v388_v10  ;;  %v202_v18 = vld [vmem:[#allocation7] sm:$0x1]  ;;  %v319_v32 = vld [vmem:[#allocation11] sm:$0x1]  ;;  %v551_v41 = vld [vmem:[#allocation17] sm:$0xf] }
  0xe1   :  { %v377_v40 = vld [vmem:[#allocation20] sm:$0x7f]  ;;  %v1027_v63 = vld [vmem:[#allocation13 + $0x8] sm:$0xff]   ;;  %s1400_s11 = smov [#allocation23]  }
  0xe2   :  { %931 = vmatpush3.bf16.msra.mxu0 %v1022_v3  ;;  %939 = vmatpush3.bf16.msra.mxu1 %v1023_v4  ;;  %378 = vst.msk [vmem:[#allocation25] sm:$0x7f] %vm373_vm2, %v377_v40  ;;  %v1026_v60 = vld [vmem:[#allocation13] sm:$0xff]   ;;  %s852_s23 = sshll.u32 %s1400_s11, 4  ;;  %s853_s23 = int_to_ptr.vmem [resolvable:$true] %s852_s23 }
  0xe3   :  { %944 = vmatprep.subr.bf16.mxu0 %v1396_v0  ;;  %963 = vmatprep.subr.mxu1 %v1396_v0  ;;  %s1296_s24 = scalar_lea.vmem %s853_s23, 128  ;;  %p1301_p13 = scmp.lt.s32.totalorder %s853_s23, %s853_s23 }
  0xe4   :  { %p1297_p12 = scmp.ne.s32.totalorder %s853_s23, %s1296_s24  ;;  %p1302_p0 = scmp.lt.s32.totalorder %s1296_s24, %s1296_s24 }
  0xe5   :  { %933 = vmatmul.mubr.msk.bf16.vlgmr.msra.gmra.mrb[0].mxu0 %vm215_vm1, %v197_v6  ;;  %941 = vmatmul.mubr.msk.bf16.vlgmr.msra.gmra.mrb[0].mxu1 %vm215_vm1, %v197_v6 }
  0xe6   :  { %945 = vmatpush3.bf16.msra.mxu0 %v1024_v7  ;;  %948 = vmatprep.mubr.msk.bf16.mxu0 %vm1397_vm0, %v1396_v0  ;;  %p1303_p1 = por %p1302_p0, %p1301_p13 }
  0xe7   :  { %946 = vmatprep.subr.bf16.mxu0 %v1396_v0  ;;  %965 = vmatprep.mubr.msk.f32.mxu1 %vm1397_vm0, %v1396_v0 }
  0xe8   :  { %p1304_p2 = pnand %p1303_p1, %p1297_p12 }
  0xea   :  { %947 = vmatpush3.bf16.msra.mxu0 %v1025_v8 }
  0xeb   :  { %991 = vmatprep.subr.bf16.mxu0 %v1398_v13 }
  0xed   :  { %949 = vmatmul.mubr.msk.bf16.vlgmr.msra.gmra.mrb[4].mxu0 %vm215_vm1, %v197_v6 }
  0xee   :  { %960 = vmatprep.mubr.msk.f32.mxu0 %vm1397_vm0, %v1396_v0  ;;  %993 = vmatpush3.bf16.msra.mxu0 %v992_v12 }
  0xef   :  { %994 = vmatprep.subr.bf16.mxu0 %v1398_v13 }
  0xf2   :  { %996 = vmatpush3.bf16.msra.mxu0 %v995_v16 }
  0xf3   :  { %968 = vmatprep.subr.mxu0 %v1396_v0 }
 0x1b8   :  { %v253_v20 = vpop.f32.mrb[0].mxu0  ;;  %v309_v22 = vpop.f32.mrb[0].mxu1 }
 0x1b9   :  { %v254_v21 = vadd.f32 %v253_v20, %v202_v18  ;;  %v934_v23 = vpop.f32.mrb[1].mxu0  ;;  %376 = vst.msk [vmem:[#allocation23 + $0x7] sm:$0x1] %vm375_vm3, %v309_v22  ;;  %v942_v25 = vpop.f32.mrb[1].mxu1 }
 0x1ba   :  { %v256_v26 = vpop.f32.mrb[2].mxu0  ;;  %v312_v28 = vpop.f32.mrb[2].mxu1 }
 0x1bb   :  { %v382_v27 = vmul.f32 0.35355338, %v254_v21  ;;  %v935_v29 = vpop.f32.mrb[3].mxu0  ;;  %v943_v30 = vpop.f32.mrb[3].mxu1 }
 0x1bd   :  { %v386_v31 = vrot.slane %v382_v27, %v385_v24 }
 0x1c0   :  { %v366_v33 = vpop.f32.mrb[4].mxu0  ;;  %v380_v34 = vld [vmem:[#allocation23] sm:$0xff] }
 0x1c1   :  { %v367_v35 = vadd.f32 %v366_v33, %v319_v32  ;;  %v950_v36 = vpop.f32.mrb[5].mxu0  ;;  %v387_v37 = vmul.f32 %v386_v31, %v380_v34 }
 0x1c2   :  { %v369_v38 = vpop.f32.mrb[6].mxu0 }
 0x1c3   :  { %379 = vst.msk [vmem:[#allocation25 + $0x7] sm:$0x1] %vm375_vm3, %v367_v35  ;;  %v951_v39 = vpop.f32.mrb[7].mxu0  ;;  %961 = vmatmul.mubr.msk.f32.vlgmr.msra.gmra.mrb[8].mxu0 %vm215_vm1, %v387_v37 }
 0x1c4   :  { %970 = vmatprep.mubr.msk.f32.mxu0 %vm1397_vm0, %v1396_v0  ;;  %969 = vmatpush3.msk.msra.mxu0 %vm555_vm4, %v551_v41 }
 0x1c5   :  { %978 = vmatprep.subr.mxu0 %v1396_v0 }
 0x1ca   :  { %v381_v55 = vld [vmem:[#allocation25] sm:$0xff] }
 0x296   :  { %v461_v42 = vpop.f32.mrb[8].mxu0 }
 0x297   :  { %v466_v43 = vsel %vm465_vm5, %v461_v42, -inf  ;;  %v962_v44 = vpop.f32.mrb[9].mxu0 }
 0x298   :  { %v467_v45 = vrot.slane %v466_v43, 4 }
 0x29a   :  { %v468_v46 = vmax.f32 %v466_v43, %v467_v45 }
 0x29c   :  { %v469_v47 = vrot.slane %v468_v46, 2 }
 0x29e   :  { %v470_v48 = vmax.f32 %v468_v46, %v469_v47 }
 0x2a0   :  { %v471_v49 = vrot.slane %v470_v48, 1 }
 0x2a2   :  { %v472_v50 = vmax.f32 %v470_v48, %v471_v49 }
 0x2a4   :  { %v473_v51 = vsub.f32 %v461_v42, %v472_v50 }
 0x2a6   :  { %v474_v52 = vmul.f32 1.442695, %v473_v51 }
 0x2a8   :  { %1028 = vpow2.f32 %v474_v52 }
 0x2b2   :  { %v1029_v53 = vpop.eup %1028 }
 0x2b3   :  { %964 = vmatpush3.msra.mxu1 %v1029_v53  ;;  %971 = vmatmul.mubr.msk.f32.vlgmr.msra.gmra.mrb[10].mxu0 %vm465_vm5, %v1029_v53 }
 0x2b4   :  { %966 = vmatmul.mubr.msk.f32.vlgmr.msra.gmra.mrb[4].mxu1 %vm476_vm6, %v1399_v54  ;;  %973 = vmatprep.subr.mxu1 %v1396_v0 }
 0x2b5   :  { %975 = vmatprep.mubr.msk.f32.mxu1 %vm1397_vm0, %v1396_v0  ;;  %979 = vmatpush3.msk.msra.mxu0 %vm555_vm4, %v551_v41 }
 0x2b6   :  { %980 = vmatprep.mubr.msk.f32.mxu0 %vm1397_vm0, %v1396_v0 }
 0x386   :  { %v625_v56 = vpop.f32.mrb[10].mxu0 }
 0x387   :  { %v629_v57 = vmul.f32 %v625_v56, %v381_v55  ;;  %v972_v58 = vpop.f32.mrb[11].mxu0  ;;  %v546_v59 = vpop.f32.mrb[4].mxu1 }
 0x388   :  { %1030 = vrcp.f32 %v546_v59  ;;  %v967_v61 = vpop.f32.mrb[5].mxu1 }
 0x389   :  { %974 = vmatpush3.msra.mxu1 %v629_v57 }
 0x38a   :  { %976 = vmatmul.mubr.msk.f32.vlgmr.msra.gmra.mrb[6].mxu1 %vm476_vm6, %v1399_v54  ;;  %983 = vmatprep.subr.bf16.mxu1 %v1396_v0 }
 0x38b   :  { %984 = vmatpush3.bf16.msra.mxu1 %v1026_v60  ;;  %987 = vmatprep.mubr.msk.bf16.mxu1 %vm1397_vm0, %v1396_v0 }
 0x38c   :  { %985 = vmatprep.subr.bf16.mxu1 %v1396_v0 }
 0x38f   :  { %986 = vmatpush3.bf16.msra.mxu1 %v1027_v63 }
 0x392   :  { %v1031_v62 = vpop.eup %1030 }
 0x393   :  { %981 = vmatmul.mubr.msk.f32.vlgmr.msra.gmra.mrb[12].mxu0 %vm465_vm5, %v1031_v62 }
 0x45d   :  { %v696_v1 = vpop.f32.mrb[6].mxu1 }
 0x45e   :  { %v977_v2 = vpop.f32.mrb[7].mxu1 }
 0x466   :  { %v769_v3 = vpop.f32.mrb[12].mxu0 }
 0x467   :  { %v773_v4 = vmul.f32 %v769_v3, %v696_v1  ;;  %v982_v5 = vpop.f32.mrb[13].mxu0 }
 0x469   :  { %v774_v6 = vpack.c.bf16 %v773_v4, %v773_v4 }
 0x46b   :  { %988 = vmatmul.mubr.msk.bf16.vlgmr.msra.gmra.mrb[8].mxu1 %vm215_vm1, %v774_v6 }
 0x46c   :  { %1307 = shalt.err (!%p1304_p2)
}
 0x46d   :  { %s1308_s17 = scalar_lea.hbm %s1730_s13, 128 }
 0x46e   :  { %p1309_p3 = scmp.ne.s32.totalorder %s1730_s13, %s1308_s17  ;;  %p1312_p4 = scmp.lt.u32.totalorder %s1308_s17, %s1730_s13 }
 0x470   :  { %p1314_p5 = pnand %p1312_p4, %p1309_p3 }
 0x472   :  { %1317 = shalt.err (!%p1314_p5)
}
 0x473   :  { %855 = dma.vmem_to_hbm [thread:$0]  %s853_s23, 128, %s1730_s13, [#allocation24]  }
 0x474   :  { %s1401_s3 = smov [#allocation25]  }
 0x475   :  { %s862_s4 = sshll.u32 %s1401_s3, 4  ;;  %s863_s4 = int_to_ptr.vmem [resolvable:$true] %s862_s4 }
 0x476   :  { %s1318_s28 = scalar_lea.vmem %s863_s4, 128  ;;  %p1323_p7 = scmp.lt.s32.totalorder %s863_s4, %s863_s4 }
 0x477   :  { %p1319_p6 = scmp.ne.s32.totalorder %s863_s4, %s1318_s28  ;;  %p1324_p8 = scmp.lt.s32.totalorder %s1318_s28, %s1318_s28 }
 0x479   :  { %p1325_p9 = por %p1324_p8, %p1323_p7 }
 0x47b   :  { %p1326_p10 = pnand %p1325_p9, %p1319_p6 }
 0x47d   :  { %1329 = shalt.err (!%p1326_p10)
}
 0x47e   :  { %s1330_s9 = scalar_lea.hbm %s1731_s14, 128 }
 0x47f   :  { %p1331_p11 = scmp.ne.s32.totalorder %s1731_s14, %s1330_s9  ;;  %p1334_p12 = scmp.lt.u32.totalorder %s1330_s9, %s1731_s14 }
 0x481   :  { %p1336_p13 = pnand %p1334_p12, %p1331_p11 }
 0x483   :  { %1339 = shalt.err (!%p1336_p13)
}
 0x484   :  { %865 = dma.vmem_to_hbm [thread:$0]  %s863_s4, 128, %s1731_s14, [#allocation24]   ;;  %v779_v0 = vld [vmem:[#allocation14] sm:$0x1] }
 0x485   :  { %s1402_s7 = smov [#allocation22]  }
 0x486   :  { %s842_s2 = sshll.u32 %s1402_s7, 4  ;;  %s843_s2 = int_to_ptr.vmem [resolvable:$true] %s842_s2 }
 0x487   :  { %s1340_s5 = scalar_lea.vmem %s843_s2, 16  ;;  %s1344_s10 = scalar_lea.vmem %s843_s2, 32 }
 0x488   :  { %p1341_p0 = scmp.ne.s32.totalorder %s843_s2, %s1340_s5  ;;  %p1345_p1 = scmp.lt.s32.totalorder %s843_s2, %s843_s2 }
 0x489   :  { %p1346_p2 = scmp.lt.s32.totalorder %s1344_s10, %s1340_s5 }
 0x48b   :  { %p1347_p3 = por %p1346_p2, %p1345_p1 }
 0x48d   :  { %p1348_p4 = pnand %p1347_p3, %p1341_p0 }
 0x53e   :  { %v829_v7 = vpop.f32.mrb[8].mxu1 }
 0x53f   :  { %v830_v8 = vadd.f32 %v829_v7, %v779_v0  ;;  %v989_v9 = vpop.f32.mrb[9].mxu1 }
 0x540   :  { %v832_v10 = vpop.f32.mrb[10].mxu1 }
 0x541   :  { %835 = vst.msk [vmem:[#allocation22] sm:$0x1] %vm375_vm3, %v830_v8  ;;  %v990_v11 = vpop.f32.mrb[11].mxu1 }
 0x542   :  { %1351 = shalt.err (!%p1348_p4)
}
 0x543   :  { %s1352_s11 = scalar_lea.hbm %s1729_s12, 16 }
 0x544   :  { %p1353_p5 = scmp.ne.s32.totalorder %s1729_s12, %s1352_s11  ;;  %p1356_p6 = scmp.lt.u32.totalorder %s1352_s11, %s1729_s12 }
 0x546   :  { %p1358_p7 = pnand %p1356_p6, %p1353_p5 }
 0x548   :  { %1361 = shalt.err (!%p1358_p7)
}
 0x549   :  { %845 = dma.vmem_to_hbm [thread:$0]  %s843_s2, 16, %s1729_s12, [#allocation4]  }
 0x54a   :  { %1376 = dma.done.wait [#allocation4], 16  }
 0x54b   :  { %1377 = vsyncadd [#allocation4], 4294967280 }
 0x54c   :  { %1378 = dma.done.wait [#allocation24], 256  }
 0x54d   :  { %1379 = vsyncadd [#allocation24], 4294967040 }
 0x54e   :  { %875 = vsyncpa [#allocation3], 1 }
 0x54f   :  { %876 = vsyncpa [#allocation6], 1 }
 0x550   :  { %877 = vsyncpa [#allocation9], 1 }
 0x551   :  { %878 = vsyncpa [#allocation12], 1 }
 0x552   :  { %879 = vsyncpa [#allocation15], 1 }
 0x553   :  { %880 = vsyncpa [#allocation18], 1 }
 0x554   :  { %881 = vsyncpa [#allocation21], 1 }
 0x555   :  { %882 = vsyncpa [#allocation4], 1 }
 0x556   :  { %883 = vsyncpa [#allocation24], 1 }

</bundles_post_ra>
